<compile_context>
chip_gen: v6e
topology: v6e:2x2x1
jax: 0.10.0
libtpu: 0.0.40
codegen_flags: <defaults>
</compile_context>

<pallas_src>
import functools

import jax
import jax.numpy as jnp
from jax.experimental import pallas as pl
from jax.experimental.pallas import tpu as pltpu

# Problem sizes consistent with Conv2d(3, 5, (3, 3))
N, CIN, H, W = 2, 3, 16, 16
COUT, KH, KW = 5, 3, 3
OH, OW = H - KH + 1, W - KW + 1   # 14, 14
HW = H * W                        # 256  (lane-dense last dim)

# Roll wrap-around safety (shape-derived invariant, keep these asserts if H/W/KH/KW change):
#  * pltpu.roll wraps; wrapped (garbage) values for shift s can only land at flat
#    positions j >= HW - s.  The largest valid-window flat index is (OH-1)*W + (OW-1)
#    and the largest shift is s_max = (KH-1)*W + (KW-1); their sum must stay < HW.
assert (OH - 1) * W + (OW - 1) + (KH - 1) * W + (KW - 1) < HW
#  * No within-row wrap inside the valid window: ow + kw never reaches W.
assert (OW - 1) + (KW - 1) < W


def conv2d_kernel(x_ref, w_ref, b_ref, o_ref, *, nb):
    """Whole-batch conv in one grid step.

    x_ref: VMEM (nb*CIN, HW)        f32  flattened input planes (lane-dense)
    w_ref: VMEM (COUT, CIN*KH*KW)   f32  column r = (ic*KH + kh)*KW + kw
    b_ref: VMEM (COUT, 1)           f32
    o_ref: VMEM (nb, COUT, HW)      f32  full-plane results; valid (OH, OW) window is
                                         sliced in the wrapper.
    """
    planes = x_ref[...]                              # (nb*CIN, HW), lane-dense
    bias_col = b_ref[...]                            # (COUT, 1)

    # One (COUT, HW) accumulator per batch element, initialized from the bias column.
    accs = [jnp.broadcast_to(bias_col, (COUT, HW)).astype(jnp.float32)
            for _ in range(nb)]

    for kh in range(KH):
        for kw in range(KW):
            s = kh * W + kw                          # static flat shift
            # shifted[:, j] == planes[:, j + s]  (valid over the (OH, OW) window)
            # One roll per (kh, kw) over ALL batch/channel planes (full occupancy).
            shifted = planes if s == 0 else pltpu.roll(planes, HW - s, axis=1)
            for ic in range(CIN):
                r = (ic * KH + kh) * KW + kw
                w_col = w_ref[:, r:r + 1]            # (COUT, 1) weight column
                for n in range(nb):
                    row = shifted[n * CIN + ic:n * CIN + ic + 1, :]   # (1, HW)
                    # Outer-product accumulate: (COUT,1)*(1,HW) -> (COUT,HW)
                    accs[n] = accs[n] + w_col * row

    # One unmasked lane-dense (COUT, HW) slab store per batch element.
    for n in range(nb):
        o_ref[n] = accs[n]


def conv2d_pallas(x, w, b):
    """x: [N, CIN, H, W] f32; w: [COUT, CIN, KH, KW] f32; b: [COUT] f32."""
    n_batch = x.shape[0]
    nb = n_batch                              # fold whole batch into one grid step
    grid = (1,)

    x_flat = x.reshape(n_batch * CIN, HW)     # lane-dense spatial layout
    w2 = w.reshape(COUT, CIN * KH * KW)       # column r = (ic*KH + kh)*KW + kw
    b2 = b.reshape(COUT, 1)

    out_full = pl.pallas_call(
        functools.partial(conv2d_kernel, nb=nb),
        out_shape=jax.ShapeDtypeStruct((n_batch, COUT, HW), jnp.float32),
        grid_spec=pltpu.PrefetchScalarGridSpec(
            num_scalar_prefetch=0,
            grid=grid,
            in_specs=[
                pl.BlockSpec((nb * CIN, HW), lambda g: (0, 0)),
                pl.BlockSpec((COUT, CIN * KH * KW), lambda g: (0, 0)),
                pl.BlockSpec((COUT, 1), lambda g: (0, 0)),
            ],
            out_specs=pl.BlockSpec((nb, COUT, HW), lambda g: (0, 0, 0)),
        ),
        compiler_params=pltpu.CompilerParams(
            dimension_semantics=("arbitrary",)),
    )(x_flat, w2, b2)

    # Slice the valid convolution window out of the full-plane results
    # (wrapper-side layout plumbing keeps all in-kernel stores unmasked 256-wide).
    return out_full.reshape(n_batch, COUT, H, W)[:, :, :OH, :OW]


def conv2d_reference(x, w, b):
    """Pure-JAX reference matching torch.nn.Conv2d(3, 5, (3, 3)) semantics."""
    out = jax.lax.conv_general_dilated(
        x, w, window_strides=(1, 1), padding="VALID",
        dimension_numbers=("NCHW", "OIHW", "NCHW"))
    return out + b[None, :, None, None]


if __name__ == "__main__":
    key = jax.random.PRNGKey(0)
    kx, kw, kb = jax.random.split(key, 3)

    # Deterministic parameter init (PyTorch-style uniform(-1/sqrt(fan_in), +1/sqrt(fan_in)))
    fan_in = CIN * KH * KW
    bound = 1.0 / (fan_in ** 0.5)
    weight = jax.random.uniform(kw, (COUT, CIN, KH, KW), jnp.float32, -bound, bound)
    bias = jax.random.uniform(kb, (COUT,), jnp.float32, -bound, bound)

    x = jax.random.normal(kx, (N, CIN, H, W), jnp.float32)

    out = conv2d_pallas(x, weight, bias)
    out = jax.block_until_ready(out)

    ref = conv2d_reference(x, weight, bias)
    assert out.shape == (N, COUT, OH, OW), out.shape
    assert jnp.allclose(out, ref, atol=1e-5, rtol=1e-5), "mismatch vs reference conv"

    print("KERNEL_OK")
</pallas_src>

<mosaic_0001>
module attributes {stable_mosaic.version = 11 : i64} {
  func.func @conv2d_kernel(%arg0: i32, %arg1: memref<6x256xf32, #tpu.memory_space<vmem>>, %arg2: memref<5x27xf32, #tpu.memory_space<vmem>>, %arg3: memref<5x1xf32, #tpu.memory_space<vmem>>, %arg4: memref<2x5x256xf32, #tpu.memory_space<vmem>>) attributes {dimension_semantics = [#tpu.dimension_semantics<arbitrary>], iteration_bounds = array<i64: 1>, scalar_prefetch = 0 : i64, scratch_operands = 0 : i64, tpu.core_type = #tpu.core_type<tc>, window_params = [{pipeline_mode = #tpu.pipeline_mode<synchronous>, transform_indices = @transform_0, window_bounds = array<i64: 6, 256>}, {pipeline_mode = #tpu.pipeline_mode<synchronous>, transform_indices = @transform_1, window_bounds = array<i64: 5, 27>}, {pipeline_mode = #tpu.pipeline_mode<synchronous>, transform_indices = @transform_2, window_bounds = array<i64: 5, 1>}, {pipeline_mode = #tpu.pipeline_mode<synchronous>, transform_indices = @transform_3, window_bounds = array<i64: 2, 5, 256>}]} {
    %c0 = arith.constant 0 : index
    %c0_0 = arith.constant 0 : index
    %0 = vector.load %arg1[%c0, %c0_0] : memref<6x256xf32, #tpu.memory_space<vmem>>, vector<6x256xf32>
    %c0_1 = arith.constant 0 : index
    %c0_2 = arith.constant 0 : index
    %1 = vector.load %arg3[%c0_1, %c0_2] : memref<5x1xf32, #tpu.memory_space<vmem>>, vector<5x1xf32>
    %2 = vector.shape_cast %1 : vector<5x1xf32> to vector<5x1xf32>
    %3 = vector.broadcast %2 : vector<5x1xf32> to vector<5x256xf32>
    %4 = vector.shape_cast %1 : vector<5x1xf32> to vector<5x1xf32>
    %5 = vector.broadcast %4 : vector<5x1xf32> to vector<5x256xf32>
    %c0_3 = arith.constant 0 : index
    %c0_4 = arith.constant 0 : index
    %6 = vector.load %arg2[%c0_3, %c0_4] : memref<5x27xf32, #tpu.memory_space<vmem>>, vector<5x1xf32>
    %7 = vector.extract_strided_slice %0 {offsets = [0, 0], sizes = [1, 256], strides = [1, 1]} : vector<6x256xf32> to vector<1x256xf32>
    %8 = vector.broadcast %6 : vector<5x1xf32> to vector<5x256xf32>
    %9 = vector.broadcast %7 : vector<1x256xf32> to vector<5x256xf32>
    %10 = arith.mulf %8, %9 : vector<5x256xf32>
    %11 = arith.addf %3, %10 : vector<5x256xf32>
    %12 = vector.extract_strided_slice %0 {offsets = [3, 0], sizes = [1, 256], strides = [1, 1]} : vector<6x256xf32> to vector<1x256xf32>
    %13 = vector.broadcast %6 : vector<5x1xf32> to vector<5x256xf32>
    %14 = vector.broadcast %12 : vector<1x256xf32> to vector<5x256xf32>
    %15 = arith.mulf %13, %14 : vector<5x256xf32>
    %16 = arith.addf %5, %15 : vector<5x256xf32>
    %c0_5 = arith.constant 0 : index
    %c9 = arith.constant 9 : index
    %17 = vector.load %arg2[%c0_5, %c9] : memref<5x27xf32, #tpu.memory_space<vmem>>, vector<5x1xf32>
    %18 = vector.extract_strided_slice %0 {offsets = [1, 0], sizes = [1, 256], strides = [1, 1]} : vector<6x256xf32> to vector<1x256xf32>
    %19 = vector.broadcast %17 : vector<5x1xf32> to vector<5x256xf32>
    %20 = vector.broadcast %18 : vector<1x256xf32> to vector<5x256xf32>
    %21 = arith.mulf %19, %20 : vector<5x256xf32>
    %22 = arith.addf %11, %21 : vector<5x256xf32>
    %23 = vector.extract_strided_slice %0 {offsets = [4, 0], sizes = [1, 256], strides = [1, 1]} : vector<6x256xf32> to vector<1x256xf32>
    %24 = vector.broadcast %17 : vector<5x1xf32> to vector<5x256xf32>
    %25 = vector.broadcast %23 : vector<1x256xf32> to vector<5x256xf32>
    %26 = arith.mulf %24, %25 : vector<5x256xf32>
    %27 = arith.addf %16, %26 : vector<5x256xf32>
    %c0_6 = arith.constant 0 : index
    %c18 = arith.constant 18 : index
    %28 = vector.load %arg2[%c0_6, %c18] : memref<5x27xf32, #tpu.memory_space<vmem>>, vector<5x1xf32>
    %29 = vector.extract_strided_slice %0 {offsets = [2, 0], sizes = [1, 256], strides = [1, 1]} : vector<6x256xf32> to vector<1x256xf32>
    %30 = vector.broadcast %28 : vector<5x1xf32> to vector<5x256xf32>
    %31 = vector.broadcast %29 : vector<1x256xf32> to vector<5x256xf32>
    %32 = arith.mulf %30, %31 : vector<5x256xf32>
    %33 = arith.addf %22, %32 : vector<5x256xf32>
    %34 = vector.extract_strided_slice %0 {offsets = [5, 0], sizes = [1, 256], strides = [1, 1]} : vector<6x256xf32> to vector<1x256xf32>
    %35 = vector.broadcast %28 : vector<5x1xf32> to vector<5x256xf32>
    %36 = vector.broadcast %34 : vector<1x256xf32> to vector<5x256xf32>
    %37 = arith.mulf %35, %36 : vector<5x256xf32>
    %38 = arith.addf %27, %37 : vector<5x256xf32>
    %c255_i32 = arith.constant 255 : i32
    %39 = tpu.dynamic_rotate %0 by %c255_i32 dim 1 : vector<6x256xf32>, i32 -> vector<6x256xf32>
    %c0_7 = arith.constant 0 : index
    %c1 = arith.constant 1 : index
    %40 = vector.load %arg2[%c0_7, %c1] : memref<5x27xf32, #tpu.memory_space<vmem>>, vector<5x1xf32>
    %41 = vector.extract_strided_slice %39 {offsets = [0, 0], sizes = [1, 256], strides = [1, 1]} : vector<6x256xf32> to vector<1x256xf32>
    %42 = vector.broadcast %40 : vector<5x1xf32> to vector<5x256xf32>
    %43 = vector.broadcast %41 : vector<1x256xf32> to vector<5x256xf32>
    %44 = arith.mulf %42, %43 : vector<5x256xf32>
    %45 = arith.addf %33, %44 : vector<5x256xf32>
    %46 = vector.extract_strided_slice %39 {offsets = [3, 0], sizes = [1, 256], strides = [1, 1]} : vector<6x256xf32> to vector<1x256xf32>
    %47 = vector.broadcast %40 : vector<5x1xf32> to vector<5x256xf32>
    %48 = vector.broadcast %46 : vector<1x256xf32> to vector<5x256xf32>
    %49 = arith.mulf %47, %48 : vector<5x256xf32>
    %50 = arith.addf %38, %49 : vector<5x256xf32>
    %c0_8 = arith.constant 0 : index
    %c10 = arith.constant 10 : index
    %51 = vector.load %arg2[%c0_8, %c10] : memref<5x27xf32, #tpu.memory_space<vmem>>, vector<5x1xf32>
    %52 = vector.extract_strided_slice %39 {offsets = [1, 0], sizes = [1, 256], strides = [1, 1]} : vector<6x256xf32> to vector<1x256xf32>
    %53 = vector.broadcast %51 : vector<5x1xf32> to vector<5x256xf32>
    %54 = vector.broadcast %52 : vector<1x256xf32> to vector<5x256xf32>
    %55 = arith.mulf %53, %54 : vector<5x256xf32>
    %56 = arith.addf %45, %55 : vector<5x256xf32>
    %57 = vector.extract_strided_slice %39 {offsets = [4, 0], sizes = [1, 256], strides = [1, 1]} : vector<6x256xf32> to vector<1x256xf32>
    %58 = vector.broadcast %51 : vector<5x1xf32> to vector<5x256xf32>
    %59 = vector.broadcast %57 : vector<1x256xf32> to vector<5x256xf32>
    %60 = arith.mulf %58, %59 : vector<5x256xf32>
    %61 = arith.addf %50, %60 : vector<5x256xf32>
    %c0_9 = arith.constant 0 : index
    %c19 = arith.constant 19 : index
    %62 = vector.load %arg2[%c0_9, %c19] : memref<5x27xf32, #tpu.memory_space<vmem>>, vector<5x1xf32>
    %63 = vector.extract_strided_slice %39 {offsets = [2, 0], sizes = [1, 256], strides = [1, 1]} : vector<6x256xf32> to vector<1x256xf32>
    %64 = vector.broadcast %62 : vector<5x1xf32> to vector<5x256xf32>
    %65 = vector.broadcast %63 : vector<1x256xf32> to vector<5x256xf32>
    %66 = arith.mulf %64, %65 : vector<5x256xf32>
    %67 = arith.addf %56, %66 : vector<5x256xf32>
    %68 = vector.extract_strided_slice %39 {offsets = [5, 0], sizes = [1, 256], strides = [1, 1]} : vector<6x256xf32> to vector<1x256xf32>
    %69 = vector.broadcast %62 : vector<5x1xf32> to vector<5x256xf32>
    %70 = vector.broadcast %68 : vector<1x256xf32> to vector<5x256xf32>
    %71 = arith.mulf %69, %70 : vector<5x256xf32>
    %72 = arith.addf %61, %71 : vector<5x256xf32>
    %c254_i32 = arith.constant 254 : i32
    %73 = tpu.dynamic_rotate %0 by %c254_i32 dim 1 : vector<6x256xf32>, i32 -> vector<6x256xf32>
    %c0_10 = arith.constant 0 : index
    %c2 = arith.constant 2 : index
    %74 = vector.load %arg2[%c0_10, %c2] : memref<5x27xf32, #tpu.memory_space<vmem>>, vector<5x1xf32>
    %75 = vector.extract_strided_slice %73 {offsets = [0, 0], sizes = [1, 256], strides = [1, 1]} : vector<6x256xf32> to vector<1x256xf32>
    %76 = vector.broadcast %74 : vector<5x1xf32> to vector<5x256xf32>
    %77 = vector.broadcast %75 : vector<1x256xf32> to vector<5x256xf32>
    %78 = arith.mulf %76, %77 : vector<5x256xf32>
    %79 = arith.addf %67, %78 : vector<5x256xf32>
    %80 = vector.extract_strided_slice %73 {offsets = [3, 0], sizes = [1, 256], strides = [1, 1]} : vector<6x256xf32> to vector<1x256xf32>
    %81 = vector.broadcast %74 : vector<5x1xf32> to vector<5x256xf32>
    %82 = vector.broadcast %80 : vector<1x256xf32> to vector<5x256xf32>
    %83 = arith.mulf %81, %82 : vector<5x256xf32>
    %84 = arith.addf %72, %83 : vector<5x256xf32>
    %c0_11 = arith.constant 0 : index
    %c11 = arith.constant 11 : index
    %85 = vector.load %arg2[%c0_11, %c11] : memref<5x27xf32, #tpu.memory_space<vmem>>, vector<5x1xf32>
    %86 = vector.extract_strided_slice %73 {offsets = [1, 0], sizes = [1, 256], strides = [1, 1]} : vector<6x256xf32> to vector<1x256xf32>
    %87 = vector.broadcast %85 : vector<5x1xf32> to vector<5x256xf32>
    %88 = vector.broadcast %86 : vector<1x256xf32> to vector<5x256xf32>
    %89 = arith.mulf %87, %88 : vector<5x256xf32>
    %90 = arith.addf %79, %89 : vector<5x256xf32>
    %91 = vector.extract_strided_slice %73 {offsets = [4, 0], sizes = [1, 256], strides = [1, 1]} : vector<6x256xf32> to vector<1x256xf32>
    %92 = vector.broadcast %85 : vector<5x1xf32> to vector<5x256xf32>
    %93 = vector.broadcast %91 : vector<1x256xf32> to vector<5x256xf32>
    %94 = arith.mulf %92, %93 : vector<5x256xf32>
    %95 = arith.addf %84, %94 : vector<5x256xf32>
    %c0_12 = arith.constant 0 : index
    %c20 = arith.constant 20 : index
    %96 = vector.load %arg2[%c0_12, %c20] : memref<5x27xf32, #tpu.memory_space<vmem>>, vector<5x1xf32>
    %97 = vector.extract_strided_slice %73 {offsets = [2, 0], sizes = [1, 256], strides = [1, 1]} : vector<6x256xf32> to vector<1x256xf32>
    %98 = vector.broadcast %96 : vector<5x1xf32> to vector<5x256xf32>
    %99 = vector.broadcast %97 : vector<1x256xf32> to vector<5x256xf32>
    %100 = arith.mulf %98, %99 : vector<5x256xf32>
    %101 = arith.addf %90, %100 : vector<5x256xf32>
    %102 = vector.extract_strided_slice %73 {offsets = [5, 0], sizes = [1, 256], strides = [1, 1]} : vector<6x256xf32> to vector<1x256xf32>
    %103 = vector.broadcast %96 : vector<5x1xf32> to vector<5x256xf32>
    %104 = vector.broadcast %102 : vector<1x256xf32> to vector<5x256xf32>
    %105 = arith.mulf %103, %104 : vector<5x256xf32>
    %106 = arith.addf %95, %105 : vector<5x256xf32>
    %c240_i32 = arith.constant 240 : i32
    %107 = tpu.dynamic_rotate %0 by %c240_i32 dim 1 : vector<6x256xf32>, i32 -> vector<6x256xf32>
    %c0_13 = arith.constant 0 : index
    %c3 = arith.constant 3 : index
    %108 = vector.load %arg2[%c0_13, %c3] : memref<5x27xf32, #tpu.memory_space<vmem>>, vector<5x1xf32>
    %109 = vector.extract_strided_slice %107 {offsets = [0, 0], sizes = [1, 256], strides = [1, 1]} : vector<6x256xf32> to vector<1x256xf32>
    %110 = vector.broadcast %108 : vector<5x1xf32> to vector<5x256xf32>
    %111 = vector.broadcast %109 : vector<1x256xf32> to vector<5x256xf32>
    %112 = arith.mulf %110, %111 : vector<5x256xf32>
    %113 = arith.addf %101, %112 : vector<5x256xf32>
    %114 = vector.extract_strided_slice %107 {offsets = [3, 0], sizes = [1, 256], strides = [1, 1]} : vector<6x256xf32> to vector<1x256xf32>
    %115 = vector.broadcast %108 : vector<5x1xf32> to vector<5x256xf32>
    %116 = vector.broadcast %114 : vector<1x256xf32> to vector<5x256xf32>
    %117 = arith.mulf %115, %116 : vector<5x256xf32>
    %118 = arith.addf %106, %117 : vector<5x256xf32>
    %c0_14 = arith.constant 0 : index
    %c12 = arith.constant 12 : index
    %119 = vector.load %arg2[%c0_14, %c12] : memref<5x27xf32, #tpu.memory_space<vmem>>, vector<5x1xf32>
    %120 = vector.extract_strided_slice %107 {offsets = [1, 0], sizes = [1, 256], strides = [1, 1]} : vector<6x256xf32> to vector<1x256xf32>
    %121 = vector.broadcast %119 : vector<5x1xf32> to vector<5x256xf32>
    %122 = vector.broadcast %120 : vector<1x256xf32> to vector<5x256xf32>
    %123 = arith.mulf %121, %122 : vector<5x256xf32>
    %124 = arith.addf %113, %123 : vector<5x256xf32>
    %125 = vector.extract_strided_slice %107 {offsets = [4, 0], sizes = [1, 256], strides = [1, 1]} : vector<6x256xf32> to vector<1x256xf32>
    %126 = vector.broadcast %119 : vector<5x1xf32> to vector<5x256xf32>
    %127 = vector.broadcast %125 : vector<1x256xf32> to vector<5x256xf32>
    %128 = arith.mulf %126, %127 : vector<5x256xf32>
    %129 = arith.addf %118, %128 : vector<5x256xf32>
    %c0_15 = arith.constant 0 : index
    %c21 = arith.constant 21 : index
    %130 = vector.load %arg2[%c0_15, %c21] : memref<5x27xf32, #tpu.memory_space<vmem>>, vector<5x1xf32>
    %131 = vector.extract_strided_slice %107 {offsets = [2, 0], sizes = [1, 256], strides = [1, 1]} : vector<6x256xf32> to vector<1x256xf32>
    %132 = vector.broadcast %130 : vector<5x1xf32> to vector<5x256xf32>
    %133 = vector.broadcast %131 : vector<1x256xf32> to vector<5x256xf32>
    %134 = arith.mulf %132, %133 : vector<5x256xf32>
    %135 = arith.addf %124, %134 : vector<5x256xf32>
    %136 = vector.extract_strided_slice %107 {offsets = [5, 0], sizes = [1, 256], strides = [1, 1]} : vector<6x256xf32> to vector<1x256xf32>
    %137 = vector.broadcast %130 : vector<5x1xf32> to vector<5x256xf32>
    %138 = vector.broadcast %136 : vector<1x256xf32> to vector<5x256xf32>
    %139 = arith.mulf %137, %138 : vector<5x256xf32>
    %140 = arith.addf %129, %139 : vector<5x256xf32>
    %c239_i32 = arith.constant 239 : i32
    %141 = tpu.dynamic_rotate %0 by %c239_i32 dim 1 : vector<6x256xf32>, i32 -> vector<6x256xf32>
    %c0_16 = arith.constant 0 : index
    %c4 = arith.constant 4 : index
    %142 = vector.load %arg2[%c0_16, %c4] : memref<5x27xf32, #tpu.memory_space<vmem>>, vector<5x1xf32>
    %143 = vector.extract_strided_slice %141 {offsets = [0, 0], sizes = [1, 256], strides = [1, 1]} : vector<6x256xf32> to vector<1x256xf32>
    %144 = vector.broadcast %142 : vector<5x1xf32> to vector<5x256xf32>
    %145 = vector.broadcast %143 : vector<1x256xf32> to vector<5x256xf32>
    %146 = arith.mulf %144, %145 : vector<5x256xf32>
    %147 = arith.addf %135, %146 : vector<5x256xf32>
    %148 = vector.extract_strided_slice %141 {offsets = [3, 0], sizes = [1, 256], strides = [1, 1]} : vector<6x256xf32> to vector<1x256xf32>
    %149 = vector.broadcast %142 : vector<5x1xf32> to vector<5x256xf32>
    %150 = vector.broadcast %148 : vector<1x256xf32> to vector<5x256xf32>
    %151 = arith.mulf %149, %150 : vector<5x256xf32>
    %152 = arith.addf %140, %151 : vector<5x256xf32>
    %c0_17 = arith.constant 0 : index
    %c13 = arith.constant 13 : index
    %153 = vector.load %arg2[%c0_17, %c13] : memref<5x27xf32, #tpu.memory_space<vmem>>, vector<5x1xf32>
    %154 = vector.extract_strided_slice %141 {offsets = [1, 0], sizes = [1, 256], strides = [1, 1]} : vector<6x256xf32> to vector<1x256xf32>
    %155 = vector.broadcast %153 : vector<5x1xf32> to vector<5x256xf32>
    %156 = vector.broadcast %154 : vector<1x256xf32> to vector<5x256xf32>
    %157 = arith.mulf %155, %156 : vector<5x256xf32>
    %158 = arith.addf %147, %157 : vector<5x256xf32>
    %159 = vector.extract_strided_slice %141 {offsets = [4, 0], sizes = [1, 256], strides = [1, 1]} : vector<6x256xf32> to vector<1x256xf32>
    %160 = vector.broadcast %153 : vector<5x1xf32> to vector<5x256xf32>
    %161 = vector.broadcast %159 : vector<1x256xf32> to vector<5x256xf32>
    %162 = arith.mulf %160, %161 : vector<5x256xf32>
    %163 = arith.addf %152, %162 : vector<5x256xf32>
    %c0_18 = arith.constant 0 : index
    %c22 = arith.constant 22 : index
    %164 = vector.load %arg2[%c0_18, %c22] : memref<5x27xf32, #tpu.memory_space<vmem>>, vector<5x1xf32>
    %165 = vector.extract_strided_slice %141 {offsets = [2, 0], sizes = [1, 256], strides = [1, 1]} : vector<6x256xf32> to vector<1x256xf32>
    %166 = vector.broadcast %164 : vector<5x1xf32> to vector<5x256xf32>
    %167 = vector.broadcast %165 : vector<1x256xf32> to vector<5x256xf32>
    %168 = arith.mulf %166, %167 : vector<5x256xf32>
    %169 = arith.addf %158, %168 : vector<5x256xf32>
    %170 = vector.extract_strided_slice %141 {offsets = [5, 0], sizes = [1, 256], strides = [1, 1]} : vector<6x256xf32> to vector<1x256xf32>
    %171 = vector.broadcast %164 : vector<5x1xf32> to vector<5x256xf32>
    %172 = vector.broadcast %170 : vector<1x256xf32> to vector<5x256xf32>
    %173 = arith.mulf %171, %172 : vector<5x256xf32>
    %174 = arith.addf %163, %173 : vector<5x256xf32>
    %c238_i32 = arith.constant 238 : i32
    %175 = tpu.dynamic_rotate %0 by %c238_i32 dim 1 : vector<6x256xf32>, i32 -> vector<6x256xf32>
    %c0_19 = arith.constant 0 : index
    %c5 = arith.constant 5 : index
    %176 = vector.load %arg2[%c0_19, %c5] : memref<5x27xf32, #tpu.memory_space<vmem>>, vector<5x1xf32>
    %177 = vector.extract_strided_slice %175 {offsets = [0, 0], sizes = [1, 256], strides = [1, 1]} : vector<6x256xf32> to vector<1x256xf32>
    %178 = vector.broadcast %176 : vector<5x1xf32> to vector<5x256xf32>
    %179 = vector.broadcast %177 : vector<1x256xf32> to vector<5x256xf32>
    %180 = arith.mulf %178, %179 : vector<5x256xf32>
    %181 = arith.addf %169, %180 : vector<5x256xf32>
    %182 = vector.extract_strided_slice %175 {offsets = [3, 0], sizes = [1, 256], strides = [1, 1]} : vector<6x256xf32> to vector<1x256xf32>
    %183 = vector.broadcast %176 : vector<5x1xf32> to vector<5x256xf32>
    %184 = vector.broadcast %182 : vector<1x256xf32> to vector<5x256xf32>
    %185 = arith.mulf %183, %184 : vector<5x256xf32>
    %186 = arith.addf %174, %185 : vector<5x256xf32>
    %c0_20 = arith.constant 0 : index
    %c14 = arith.constant 14 : index
    %187 = vector.load %arg2[%c0_20, %c14] : memref<5x27xf32, #tpu.memory_space<vmem>>, vector<5x1xf32>
    %188 = vector.extract_strided_slice %175 {offsets = [1, 0], sizes = [1, 256], strides = [1, 1]} : vector<6x256xf32> to vector<1x256xf32>
    %189 = vector.broadcast %187 : vector<5x1xf32> to vector<5x256xf32>
    %190 = vector.broadcast %188 : vector<1x256xf32> to vector<5x256xf32>
    %191 = arith.mulf %189, %190 : vector<5x256xf32>
    %192 = arith.addf %181, %191 : vector<5x256xf32>
    %193 = vector.extract_strided_slice %175 {offsets = [4, 0], sizes = [1, 256], strides = [1, 1]} : vector<6x256xf32> to vector<1x256xf32>
    %194 = vector.broadcast %187 : vector<5x1xf32> to vector<5x256xf32>
    %195 = vector.broadcast %193 : vector<1x256xf32> to vector<5x256xf32>
    %196 = arith.mulf %194, %195 : vector<5x256xf32>
    %197 = arith.addf %186, %196 : vector<5x256xf32>
    %c0_21 = arith.constant 0 : index
    %c23 = arith.constant 23 : index
    %198 = vector.load %arg2[%c0_21, %c23] : memref<5x27xf32, #tpu.memory_space<vmem>>, vector<5x1xf32>
    %199 = vector.extract_strided_slice %175 {offsets = [2, 0], sizes = [1, 256], strides = [1, 1]} : vector<6x256xf32> to vector<1x256xf32>
    %200 = vector.broadcast %198 : vector<5x1xf32> to vector<5x256xf32>
    %201 = vector.broadcast %199 : vector<1x256xf32> to vector<5x256xf32>
    %202 = arith.mulf %200, %201 : vector<5x256xf32>
    %203 = arith.addf %192, %202 : vector<5x256xf32>
    %204 = vector.extract_strided_slice %175 {offsets = [5, 0], sizes = [1, 256], strides = [1, 1]} : vector<6x256xf32> to vector<1x256xf32>
    %205 = vector.broadcast %198 : vector<5x1xf32> to vector<5x256xf32>
    %206 = vector.broadcast %204 : vector<1x256xf32> to vector<5x256xf32>
    %207 = arith.mulf %205, %206 : vector<5x256xf32>
    %208 = arith.addf %197, %207 : vector<5x256xf32>
    %c224_i32 = arith.constant 224 : i32
    %209 = tpu.dynamic_rotate %0 by %c224_i32 dim 1 : vector<6x256xf32>, i32 -> vector<6x256xf32>
    %c0_22 = arith.constant 0 : index
    %c6 = arith.constant 6 : index
    %210 = vector.load %arg2[%c0_22, %c6] : memref<5x27xf32, #tpu.memory_space<vmem>>, vector<5x1xf32>
    %211 = vector.extract_strided_slice %209 {offsets = [0, 0], sizes = [1, 256], strides = [1, 1]} : vector<6x256xf32> to vector<1x256xf32>
    %212 = vector.broadcast %210 : vector<5x1xf32> to vector<5x256xf32>
    %213 = vector.broadcast %211 : vector<1x256xf32> to vector<5x256xf32>
    %214 = arith.mulf %212, %213 : vector<5x256xf32>
    %215 = arith.addf %203, %214 : vector<5x256xf32>
    %216 = vector.extract_strided_slice %209 {offsets = [3, 0], sizes = [1, 256], strides = [1, 1]} : vector<6x256xf32> to vector<1x256xf32>
    %217 = vector.broadcast %210 : vector<5x1xf32> to vector<5x256xf32>
    %218 = vector.broadcast %216 : vector<1x256xf32> to vector<5x256xf32>
    %219 = arith.mulf %217, %218 : vector<5x256xf32>
    %220 = arith.addf %208, %219 : vector<5x256xf32>
    %c0_23 = arith.constant 0 : index
    %c15 = arith.constant 15 : index
    %221 = vector.load %arg2[%c0_23, %c15] : memref<5x27xf32, #tpu.memory_space<vmem>>, vector<5x1xf32>
    %222 = vector.extract_strided_slice %209 {offsets = [1, 0], sizes = [1, 256], strides = [1, 1]} : vector<6x256xf32> to vector<1x256xf32>
    %223 = vector.broadcast %221 : vector<5x1xf32> to vector<5x256xf32>
    %224 = vector.broadcast %222 : vector<1x256xf32> to vector<5x256xf32>
    %225 = arith.mulf %223, %224 : vector<5x256xf32>
    %226 = arith.addf %215, %225 : vector<5x256xf32>
    %227 = vector.extract_strided_slice %209 {offsets = [4, 0], sizes = [1, 256], strides = [1, 1]} : vector<6x256xf32> to vector<1x256xf32>
    %228 = vector.broadcast %221 : vector<5x1xf32> to vector<5x256xf32>
    %229 = vector.broadcast %227 : vector<1x256xf32> to vector<5x256xf32>
    %230 = arith.mulf %228, %229 : vector<5x256xf32>
    %231 = arith.addf %220, %230 : vector<5x256xf32>
    %c0_24 = arith.constant 0 : index
    %c24 = arith.constant 24 : index
    %232 = vector.load %arg2[%c0_24, %c24] : memref<5x27xf32, #tpu.memory_space<vmem>>, vector<5x1xf32>
    %233 = vector.extract_strided_slice %209 {offsets = [2, 0], sizes = [1, 256], strides = [1, 1]} : vector<6x256xf32> to vector<1x256xf32>
    %234 = vector.broadcast %232 : vector<5x1xf32> to vector<5x256xf32>
    %235 = vector.broadcast %233 : vector<1x256xf32> to vector<5x256xf32>
    %236 = arith.mulf %234, %235 : vector<5x256xf32>
    %237 = arith.addf %226, %236 : vector<5x256xf32>
    %238 = vector.extract_strided_slice %209 {offsets = [5, 0], sizes = [1, 256], strides = [1, 1]} : vector<6x256xf32> to vector<1x256xf32>
    %239 = vector.broadcast %232 : vector<5x1xf32> to vector<5x256xf32>
    %240 = vector.broadcast %238 : vector<1x256xf32> to vector<5x256xf32>
    %241 = arith.mulf %239, %240 : vector<5x256xf32>
    %242 = arith.addf %231, %241 : vector<5x256xf32>
    %c223_i32 = arith.constant 223 : i32
    %243 = tpu.dynamic_rotate %0 by %c223_i32 dim 1 : vector<6x256xf32>, i32 -> vector<6x256xf32>
    %c0_25 = arith.constant 0 : index
    %c7 = arith.constant 7 : index
    %244 = vector.load %arg2[%c0_25, %c7] : memref<5x27xf32, #tpu.memory_space<vmem>>, vector<5x1xf32>
    %245 = vector.extract_strided_slice %243 {offsets = [0, 0], sizes = [1, 256], strides = [1, 1]} : vector<6x256xf32> to vector<1x256xf32>
    %246 = vector.broadcast %244 : vector<5x1xf32> to vector<5x256xf32>
    %247 = vector.broadcast %245 : vector<1x256xf32> to vector<5x256xf32>
    %248 = arith.mulf %246, %247 : vector<5x256xf32>
    %249 = arith.addf %237, %248 : vector<5x256xf32>
    %250 = vector.extract_strided_slice %243 {offsets = [3, 0], sizes = [1, 256], strides = [1, 1]} : vector<6x256xf32> to vector<1x256xf32>
    %251 = vector.broadcast %244 : vector<5x1xf32> to vector<5x256xf32>
    %252 = vector.broadcast %250 : vector<1x256xf32> to vector<5x256xf32>
    %253 = arith.mulf %251, %252 : vector<5x256xf32>
    %254 = arith.addf %242, %253 : vector<5x256xf32>
    %c0_26 = arith.constant 0 : index
    %c16 = arith.constant 16 : index
    %255 = vector.load %arg2[%c0_26, %c16] : memref<5x27xf32, #tpu.memory_space<vmem>>, vector<5x1xf32>
    %256 = vector.extract_strided_slice %243 {offsets = [1, 0], sizes = [1, 256], strides = [1, 1]} : vector<6x256xf32> to vector<1x256xf32>
    %257 = vector.broadcast %255 : vector<5x1xf32> to vector<5x256xf32>
    %258 = vector.broadcast %256 : vector<1x256xf32> to vector<5x256xf32>
    %259 = arith.mulf %257, %258 : vector<5x256xf32>
    %260 = arith.addf %249, %259 : vector<5x256xf32>
    %261 = vector.extract_strided_slice %243 {offsets = [4, 0], sizes = [1, 256], strides = [1, 1]} : vector<6x256xf32> to vector<1x256xf32>
    %262 = vector.broadcast %255 : vector<5x1xf32> to vector<5x256xf32>
    %263 = vector.broadcast %261 : vector<1x256xf32> to vector<5x256xf32>
    %264 = arith.mulf %262, %263 : vector<5x256xf32>
    %265 = arith.addf %254, %264 : vector<5x256xf32>
    %c0_27 = arith.constant 0 : index
    %c25 = arith.constant 25 : index
    %266 = vector.load %arg2[%c0_27, %c25] : memref<5x27xf32, #tpu.memory_space<vmem>>, vector<5x1xf32>
    %267 = vector.extract_strided_slice %243 {offsets = [2, 0], sizes = [1, 256], strides = [1, 1]} : vector<6x256xf32> to vector<1x256xf32>
    %268 = vector.broadcast %266 : vector<5x1xf32> to vector<5x256xf32>
    %269 = vector.broadcast %267 : vector<1x256xf32> to vector<5x256xf32>
    %270 = arith.mulf %268, %269 : vector<5x256xf32>
    %271 = arith.addf %260, %270 : vector<5x256xf32>
    %272 = vector.extract_strided_slice %243 {offsets = [5, 0], sizes = [1, 256], strides = [1, 1]} : vector<6x256xf32> to vector<1x256xf32>
    %273 = vector.broadcast %266 : vector<5x1xf32> to vector<5x256xf32>
    %274 = vector.broadcast %272 : vector<1x256xf32> to vector<5x256xf32>
    %275 = arith.mulf %273, %274 : vector<5x256xf32>
    %276 = arith.addf %265, %275 : vector<5x256xf32>
    %c222_i32 = arith.constant 222 : i32
    %277 = tpu.dynamic_rotate %0 by %c222_i32 dim 1 : vector<6x256xf32>, i32 -> vector<6x256xf32>
    %c0_28 = arith.constant 0 : index
    %c8 = arith.constant 8 : index
    %278 = vector.load %arg2[%c0_28, %c8] : memref<5x27xf32, #tpu.memory_space<vmem>>, vector<5x1xf32>
    %279 = vector.extract_strided_slice %277 {offsets = [0, 0], sizes = [1, 256], strides = [1, 1]} : vector<6x256xf32> to vector<1x256xf32>
    %280 = vector.broadcast %278 : vector<5x1xf32> to vector<5x256xf32>
    %281 = vector.broadcast %279 : vector<1x256xf32> to vector<5x256xf32>
    %282 = arith.mulf %280, %281 : vector<5x256xf32>
    %283 = arith.addf %271, %282 : vector<5x256xf32>
    %284 = vector.extract_strided_slice %277 {offsets = [3, 0], sizes = [1, 256], strides = [1, 1]} : vector<6x256xf32> to vector<1x256xf32>
    %285 = vector.broadcast %278 : vector<5x1xf32> to vector<5x256xf32>
    %286 = vector.broadcast %284 : vector<1x256xf32> to vector<5x256xf32>
    %287 = arith.mulf %285, %286 : vector<5x256xf32>
    %288 = arith.addf %276, %287 : vector<5x256xf32>
    %c0_29 = arith.constant 0 : index
    %c17 = arith.constant 17 : index
    %289 = vector.load %arg2[%c0_29, %c17] : memref<5x27xf32, #tpu.memory_space<vmem>>, vector<5x1xf32>
    %290 = vector.extract_strided_slice %277 {offsets = [1, 0], sizes = [1, 256], strides = [1, 1]} : vector<6x256xf32> to vector<1x256xf32>
    %291 = vector.broadcast %289 : vector<5x1xf32> to vector<5x256xf32>
    %292 = vector.broadcast %290 : vector<1x256xf32> to vector<5x256xf32>
    %293 = arith.mulf %291, %292 : vector<5x256xf32>
    %294 = arith.addf %283, %293 : vector<5x256xf32>
    %295 = vector.extract_strided_slice %277 {offsets = [4, 0], sizes = [1, 256], strides = [1, 1]} : vector<6x256xf32> to vector<1x256xf32>
    %296 = vector.broadcast %289 : vector<5x1xf32> to vector<5x256xf32>
    %297 = vector.broadcast %295 : vector<1x256xf32> to vector<5x256xf32>
    %298 = arith.mulf %296, %297 : vector<5x256xf32>
    %299 = arith.addf %288, %298 : vector<5x256xf32>
    %c0_30 = arith.constant 0 : index
    %c26 = arith.constant 26 : index
    %300 = vector.load %arg2[%c0_30, %c26] : memref<5x27xf32, #tpu.memory_space<vmem>>, vector<5x1xf32>
    %301 = vector.extract_strided_slice %277 {offsets = [2, 0], sizes = [1, 256], strides = [1, 1]} : vector<6x256xf32> to vector<1x256xf32>
    %302 = vector.broadcast %300 : vector<5x1xf32> to vector<5x256xf32>
    %303 = vector.broadcast %301 : vector<1x256xf32> to vector<5x256xf32>
    %304 = arith.mulf %302, %303 : vector<5x256xf32>
    %305 = arith.addf %294, %304 : vector<5x256xf32>
    %306 = vector.extract_strided_slice %277 {offsets = [5, 0], sizes = [1, 256], strides = [1, 1]} : vector<6x256xf32> to vector<1x256xf32>
    %307 = vector.broadcast %300 : vector<5x1xf32> to vector<5x256xf32>
    %308 = vector.broadcast %306 : vector<1x256xf32> to vector<5x256xf32>
    %309 = arith.mulf %307, %308 : vector<5x256xf32>
    %310 = arith.addf %299, %309 : vector<5x256xf32>
    %c0_31 = arith.constant 0 : index
    %c0_32 = arith.constant 0 : index
    %c0_33 = arith.constant 0 : index
    %311 = vector.load %arg4[%c0_31, %c0_32, %c0_33] : memref<2x5x256xf32, #tpu.memory_space<vmem>>, vector<1x5x256xf32>
    %312 = vector.shape_cast %311 : vector<1x5x256xf32> to vector<5x256xf32>
    %313 = vector.shape_cast %305 : vector<5x256xf32> to vector<1x5x256xf32>
    tpu.vector_store %arg4[%c0_31, %c0_32, %c0_33], %313 {strides = array<i32>} : memref<2x5x256xf32, #tpu.memory_space<vmem>>, vector<1x5x256xf32>,
    %c1_34 = arith.constant 1 : index
    %c0_35 = arith.constant 0 : index
    %c0_36 = arith.constant 0 : index
    %314 = vector.load %arg4[%c1_34, %c0_35, %c0_36] : memref<2x5x256xf32, #tpu.memory_space<vmem>>, vector<1x5x256xf32>
    %315 = vector.shape_cast %314 : vector<1x5x256xf32> to vector<5x256xf32>
    %316 = vector.shape_cast %310 : vector<5x256xf32> to vector<1x5x256xf32>
    tpu.vector_store %arg4[%c1_34, %c0_35, %c0_36], %316 {strides = array<i32>} : memref<2x5x256xf32, #tpu.memory_space<vmem>>, vector<1x5x256xf32>,
    return
  }
  func.func @transform_0(%arg0: i32) -> (i32, i32) {
    %c0_i32 = arith.constant 0 : i32
    %c0_i32_0 = arith.constant 0 : i32
    %c0_i32_1 = arith.constant 0 : i32
    return %c0_i32, %c0_i32_0 : i32, i32
  }
  func.func @transform_1(%arg0: i32) -> (i32, i32) {
    %c0_i32 = arith.constant 0 : i32
    %c0_i32_0 = arith.constant 0 : i32
    %c0_i32_1 = arith.constant 0 : i32
    return %c0_i32, %c0_i32_0 : i32, i32
  }
  func.func @transform_2(%arg0: i32) -> (i32, i32) {
    %c0_i32 = arith.constant 0 : i32
    %c0_i32_0 = arith.constant 0 : i32
    %c0_i32_1 = arith.constant 0 : i32
    return %c0_i32, %c0_i32_0 : i32, i32
  }
  func.func @transform_3(%arg0: i32) -> (i32, i32, i32) {
    %c0_i32 = arith.constant 0 : i32
    %c0_i32_0 = arith.constant 0 : i32
    %c0_i32_1 = arith.constant 0 : i32
    %c0_i32_2 = arith.constant 0 : i32
    return %c0_i32, %c0_i32_0, %c0_i32_1 : i32, i32, i32
  }
}

</mosaic_0001>

<bundles_post_ra>
// kernel: tpu_custom_call.1
= control target key start
LH: loop header
LB: loop body
LE: loop exit
PB: predicated region body
PF: predicated region fallthrough
CT: control target
= control target key end

     0   :  { %8 = vsyncpa [#allocation3], 0  ;;  %s948_s12 = smov [#allocation2]   ;;  %s1238_s0 = inlined_call_operand.hbm [shape: f32[6,256], index: 0, kind: input, shape index: {}]   ;;  %s1239_s1 = inlined_call_operand.vmem [shape: f32[5,27], index: 1, kind: input, shape index: {}]   ;;  %s1240_s2 = inlined_call_operand.vmem [shape: f32[5,1], index: 2, kind: input, shape index: {}]   ;;  %s1241_s3 = inlined_call_operand.vmem [shape: f32[2,5,256], index: 3, kind: output, shape index: {}]  }
   0x1   :  { %s15_s13 = sshll.u32 %s948_s12, 4  ;;  %s16_s13 = int_to_ptr.vmem [resolvable:$true] %s15_s13 }
   0x2   :  { %s934_s14 = scalar_lea.vmem %s16_s13, 256  ;;  %p939_p1 = scmp.lt.s32.totalorder %s16_s13, %s16_s13 }
   0x3   :  { %p935_p0 = scmp.ne.s32.totalorder %s16_s13, %s934_s14  ;;  %p940_p2 = scmp.lt.s32.totalorder %s934_s14, %s934_s14 }
   0x5   :  { %p941_p3 = por %p940_p2, %p939_p1 }
   0x7   :  { %p942_p4 = pnand %p941_p3, %p935_p0 }
   0x9   :  { %945 = shalt.err (!%p942_p4)
}
   0xa   :  { %18 = dma.hbm_to_vmem [thread:$0]  %s1238_s0, 256, %s16_s13, [#allocation3]  }
   0xb   :  { %946 = dma.done.wait [#allocation3], 256  }
   0xc   :  { %947 = vsyncadd [#allocation3], 4294967040  ;;  %v949_v0 = vmov 9   ;;  %v950_v1 = vmov 0   ;;  %v1010_v2 = vld [vmem:[%s1239_s1] sm:$0x1f]  ;;  %v40_v31 = vlaneseq }
   0xd   :  { %899 = vset.pattern.permute.xlu1 %v949_v0  ;;  %898 = vset.pattern.permute.xlu0 %v950_v1  ;;  %v28_v3 = vld [vmem:[%s1240_s2] sm:$0x1f]  ;;  %v951_v4 = vmov 18   ;;  %v1020_v6 = vld [vmem:[#allocation2 + $0x8] sm:$0x3f]  ;;  %s952_s0 = smov 127  }
   0xe   :  { %65 = vperm.xlu1 %899, %v1010_v2   ;;  %31 = vperm.xlu0 %898, %v28_v3   ;;  %v1018_v5 = vld [vmem:[#allocation2] sm:$0x3f]  ;;  %v953_v7 = vmov 1   ;;  %v954_v8 = vmov 10   ;;  %s955_s1 = smov 126   ;;  %v956_v9 = vmov 19  }
   0xf   :  { %v957_v10 = vmov 2   ;;  %v958_v11 = vmov 11   ;;  %v959_v12 = vmov 3   ;;  %v960_v13 = vmov 12   ;;  %s962_s2 = smov 111   ;;  %s963_s21 = smov 112  }
  0x10   :  { %v961_v14 = vmov 20   ;;  %v964_v15 = vmov 13   ;;  %v965_v16 = vmov 21   ;;  %s966_s22 = smov 110   ;;  %v967_v17 = vmov 14   ;;  %s969_s23 = smov 96  }
  0x11   :  { %v968_v18 = vmov 4   ;;  %v970_v19 = vmov 15   ;;  %v971_v20 = vmov 22   ;;  %s972_s24 = smov 95   ;;  %v973_v21 = vmov 16   ;;  %s976_s25 = smov 94  }
  0x12   :  { %900 = vset.pattern.permute.xlu1 %v951_v4  ;;  %37 = vperm.xlu0 %898, %v1010_v2   ;;  %v974_v22 = vmov 5   ;;  %v975_v23 = vmov 23   ;;  %v977_v24 = vmov 17   ;;  %v978_v25 = vmov 6  }
  0x13   :  { %93 = vperm.xlu1 %900, %v1010_v2   ;;  %v979_v26 = vmov 26   ;;  %v980_v27 = vmov 24   ;;  %v981_v28 = vmov 7   ;;  %v982_v29 = vmov 25  }
  0x14   :  { %v983_v30 = vmov 8   ;;  %v41_v32 = vshrl.u32 %v40_v31, 7  ;;  %v1072_v40 = vand.u32 127, %v40_v31 }
  0x16   :  { %120 = vrot.lane.b32.xlu0 %v1018_v5, %s952_s0  ;;  %v1064_v35 = vsub.s32 0, %v41_v32  ;;  %v1066_v36 = vsub.s32 3, %v41_v32  ;;  %v1078_v44 = vsub.s32 1, %v41_v32  ;;  %v1080_v45 = vsub.s32 4, %v41_v32 }
  0x17   :  { %122 = vrot.lane.b32.xlu1 %v1020_v6, %s952_s0  ;;  %901 = vset.pattern.permute.xlu0 %v953_v7  ;;  %v1082_v48 = vsub.s32 2, %v41_v32  ;;  %vm126_vm0 = vcmp.lt.s32.totalorder %v1072_v40, 127  ;;  %v1085_v52 = vsub.s32 5, %v41_v32  ;;  %vm217_vm1 = vcmp.lt.s32.totalorder %v1072_v40, 126 }
  0x18   :  { %902 = vset.pattern.permute.xlu1 %v954_v8  ;;  %v43_v38 = vrot.slane %v1018_v5, %v1064_v35  ;;  %v47_v39 = vrot.slane %v1020_v6, %v1064_v35  ;;  %v55_v41 = vrot.slane %v1018_v5, %v1066_v36  ;;  %v59_v42 = vrot.slane %v1020_v6, %v1066_v36 }
  0x19   :  { %v71_v54 = vrot.slane %v1018_v5, %v1078_v44  ;;  %v75_v55 = vrot.slane %v1020_v6, %v1078_v44  ;;  %v83_v56 = vrot.slane %v1018_v5, %v1080_v45  ;;  %v87_v57 = vrot.slane %v1020_v6, %v1080_v45 }
  0x1a   :  { %130 = vperm.xlu0 %901, %v1010_v2   ;;  %v99_v62 = vrot.slane %v1018_v5, %v1082_v48  ;;  %v103_v1 = vrot.slane %v1020_v6, %v1082_v48  ;;  %vm308_vm2 = vcmp.lt.s32.totalorder %v1072_v40, 112  ;;  %vm399_vm3 = vcmp.lt.s32.totalorder %v1072_v40, 111 }
  0x1b   :  { %158 = vperm.xlu1 %902, %v1010_v2   ;;  %vm490_vm4 = vcmp.lt.s32.totalorder %v1072_v40, 110  ;;  %vm581_vm5 = vcmp.lt.s32.totalorder %v1072_v40, 96  ;;  %vm672_vm6 = vcmp.lt.s32.totalorder %v1072_v40, 95  ;;  %vm763_vm7 = vcmp.lt.s32.totalorder %v1072_v40, 94 }
  0x1e   :  { %213 = vrot.lane.b32.xlu0 %v1018_v5, %s955_s1 }
  0x1f   :  { %903 = vset.pattern.permute.xlu1 %v956_v9  ;;  %904 = vset.pattern.permute.xlu0 %v957_v10 }
  0x20   :  { %186 = vperm.xlu1 %903, %v1010_v2  }
  0x22   :  { %221 = vperm.xlu0 %904, %v1010_v2  }
  0x24   :  { %215 = vrot.lane.b32.xlu1 %v1020_v6, %s955_s1 }
  0x25   :  { %905 = vset.pattern.permute.xlu1 %v958_v11 }
  0x26   :  { %907 = vset.pattern.permute.xlu0 %v959_v12  ;;  %v115_v12 = vrot.slane %v1020_v6, %v1085_v52 }
  0x27   :  { %312 = vperm.xlu0 %907, %v1010_v2  }
  0x28   :  { %249 = vperm.xlu1 %905, %v1010_v2  }
  0x2b   :  { %908 = vset.pattern.permute.xlu0 %v960_v13 }
  0x2c   :  { %906 = vset.pattern.permute.xlu1 %v961_v14  ;;  %340 = vperm.xlu0 %908, %v1010_v2  }
  0x2d   :  { %277 = vperm.xlu1 %906, %v1010_v2  }
  0x30   :  { %395 = vrot.lane.b32.xlu0 %v1018_v5, %s962_s2 }
  0x31   :  { %304 = vrot.lane.b32.xlu1 %v1018_v5, %s963_s21  ;;  %911 = vset.pattern.permute.xlu0 %v964_v15 }
  0x32   :  { %909 = vset.pattern.permute.xlu1 %v965_v16 }
  0x34   :  { %431 = vperm.xlu0 %911, %v1010_v2  }
  0x35   :  { %306 = vrot.lane.b32.xlu1 %v1020_v6, %s963_s21 }
  0x38   :  { %486 = vrot.lane.b32.xlu0 %v1018_v5, %s966_s22 }
  0x39   :  { %368 = vperm.xlu1 %909, %v1010_v2   ;;  %914 = vset.pattern.permute.xlu0 %v967_v17 }
  0x3c   :  { %522 = vperm.xlu0 %914, %v1010_v2  }
  0x3d   :  { %910 = vset.pattern.permute.xlu1 %v968_v18 }
  0x3e   :  { %403 = vperm.xlu1 %910, %v1010_v2  }
  0x40   :  { %577 = vrot.lane.b32.xlu0 %v1018_v5, %s969_s23 }
  0x41   :  { %917 = vset.pattern.permute.xlu0 %v970_v19 }
  0x42   :  { %397 = vrot.lane.b32.xlu1 %v1020_v6, %s962_s2 }
  0x43   :  { %912 = vset.pattern.permute.xlu1 %v971_v20 }
  0x44   :  { %613 = vperm.xlu0 %917, %v1010_v2  }
  0x46   :  { %459 = vperm.xlu1 %912, %v1010_v2  }
  0x48   :  { %668 = vrot.lane.b32.xlu0 %v1018_v5, %s972_s24 }
  0x49   :  { %920 = vset.pattern.permute.xlu0 %v973_v21 }
  0x4a   :  { %913 = vset.pattern.permute.xlu1 %v974_v22 }
  0x4b   :  { %494 = vperm.xlu1 %913, %v1010_v2  }
  0x4c   :  { %704 = vperm.xlu0 %920, %v1010_v2  }
  0x4f   :  { %488 = vrot.lane.b32.xlu1 %v1020_v6, %s966_s22 }
  0x50   :  { %915 = vset.pattern.permute.xlu1 %v975_v23  ;;  %759 = vrot.lane.b32.xlu0 %v1018_v5, %s976_s25 }
  0x51   :  { %923 = vset.pattern.permute.xlu0 %v977_v24 }
  0x53   :  { %550 = vperm.xlu1 %915, %v1010_v2  }
  0x54   :  { %795 = vperm.xlu0 %923, %v1010_v2  }
  0x57   :  { %916 = vset.pattern.permute.xlu1 %v978_v25 }
  0x58   :  { %585 = vperm.xlu1 %916, %v1010_v2   ;;  %925 = vset.pattern.permute.xlu0 %v979_v26 }
  0x5c   :  { %579 = vrot.lane.b32.xlu1 %v1020_v6, %s969_s23 }
  0x5d   :  { %918 = vset.pattern.permute.xlu1 %v980_v27 }
  0x60   :  { %641 = vperm.xlu1 %918, %v1010_v2  }
  0x64   :  { %919 = vset.pattern.permute.xlu1 %v981_v28 }
  0x65   :  { %676 = vperm.xlu1 %919, %v1010_v2  }
  0x69   :  { %670 = vrot.lane.b32.xlu1 %v1020_v6, %s972_s24 }
  0x6a   :  { %921 = vset.pattern.permute.xlu1 %v982_v29 }
  0x6d   :  { %732 = vperm.xlu1 %921, %v1010_v2  }
  0x71   :  { %922 = vset.pattern.permute.xlu1 %v983_v30 }
  0x72   :  { %767 = vperm.xlu1 %922, %v1010_v2  }
  0x76   :  { %761 = vrot.lane.b32.xlu1 %v1020_v6, %s976_s25 }
  0x77   :  { %924 = vset.pattern.permute.xlu1 %v979_v26 }
  0x7a   :  { %823 = vperm.xlu1 %924, %v1010_v2   ;;  %v111_v2 = vrot.slane %v1018_v5, %v1085_v52 }
  0x89   :  { %v66_v33 = vpop.permute.xlu1 %65  ;;  %v32_v34 = vpop.permute.xlu0 %31 }
  0x8a   :  { %v76_v4 = vmul.f32 %v71_v54, %v66_v33  ;;  %v77_v7 = vmul.f32 %v75_v55, %v66_v33  ;;  %v88_v10 = vmul.f32 %v83_v56, %v66_v33  ;;  %v89_v11 = vmul.f32 %v87_v57, %v66_v33 }
  0x8d   :  { %v38_v37 = vpop.permute.xlu0 %37 }
  0x8e   :  { %v94_v43 = vpop.permute.xlu1 %93  ;;  %v48_v46 = vmul.f32 %v43_v38, %v38_v37  ;;  %v49_v47 = vmul.f32 %v47_v39, %v38_v37  ;;  %v60_v50 = vmul.f32 %v55_v41, %v38_v37  ;;  %v61_v51 = vmul.f32 %v59_v42, %v38_v37 }
  0x8f   :  { %v104_v19 = vmul.f32 %v99_v62, %v94_v43  ;;  %v105_v20 = vmul.f32 %v103_v1, %v94_v43  ;;  %v116_v25 = vmul.f32 %v111_v2, %v94_v43  ;;  %v117_v26 = vmul.f32 %v115_v12, %v94_v43 }
  0x90   :  { %v50_v60 = vadd.f32 %v48_v46, %v32_v34  ;;  %v51_v61 = vadd.f32 %v49_v47, %v32_v34  ;;  %v62_v63 = vadd.f32 %v60_v50, %v32_v34  ;;  %v63_v0 = vadd.f32 %v61_v51, %v32_v34 }
  0x91   :  { %v121_v49 = vpop.permute.xlu0 %120 }
  0x92   :  { %v123_v53 = vpop.permute.xlu1 %122  ;;  %v78_v14 = vadd.f32 %v76_v4, %v50_v60  ;;  %v79_v15 = vadd.f32 %v77_v7, %v51_v61  ;;  %v90_v17 = vadd.f32 %v88_v10, %v62_v63  ;;  %v91_v18 = vadd.f32 %v89_v11, %v63_v0 }
  0x93   :  { %v1095_v58 = vsel %vm126_vm0, %v121_v49, %v123_v53  ;;  %v1097_v59 = vsel %vm126_vm0, %v123_v53, %v121_v49 }
  0x94   :  { %v136_v8 = vrot.slane %v1095_v58, %v1064_v35  ;;  %v140_v9 = vrot.slane %v1097_v59, %v1064_v35  ;;  %v148_v5 = vrot.slane %v1095_v58, %v1066_v36  ;;  %v152_v16 = vrot.slane %v1097_v59, %v1066_v36 }
  0x95   :  { %v131_v13 = vpop.permute.xlu0 %130  ;;  %v164_v6 = vrot.slane %v1095_v58, %v1078_v44  ;;  %v168_v23 = vrot.slane %v1097_v59, %v1078_v44  ;;  %v176_v27 = vrot.slane %v1095_v58, %v1080_v45  ;;  %v180_v28 = vrot.slane %v1097_v59, %v1080_v45 }
  0x96   :  { %v159_v3 = vpop.permute.xlu1 %158  ;;  %v141_v21 = vmul.f32 %v136_v8, %v131_v13  ;;  %v142_v22 = vmul.f32 %v140_v9, %v131_v13  ;;  %v106_v29 = vadd.f32 %v104_v19, %v78_v14  ;;  %v107_v30 = vadd.f32 %v105_v20, %v79_v15 }
  0x97   :  { %v153_v31 = vmul.f32 %v148_v5, %v131_v13  ;;  %v154_v32 = vmul.f32 %v152_v16, %v131_v13  ;;  %v118_v34 = vadd.f32 %v116_v25, %v90_v17  ;;  %v119_v37 = vadd.f32 %v117_v26, %v91_v18 }
  0x98   :  { %v143_v38 = vadd.f32 %v141_v21, %v106_v29  ;;  %v144_v39 = vadd.f32 %v142_v22, %v107_v30  ;;  %v169_v41 = vmul.f32 %v164_v6, %v159_v3  ;;  %v170_v42 = vmul.f32 %v168_v23, %v159_v3 }
  0x99   :  { %v214_v33 = vpop.permute.xlu0 %213  ;;  %v181_v47 = vmul.f32 %v176_v27, %v159_v3  ;;  %v182_v43 = vmul.f32 %v180_v28, %v159_v3  ;;  %v155_v51 = vadd.f32 %v153_v31, %v118_v34  ;;  %v156_v53 = vadd.f32 %v154_v32, %v119_v37 }
  0x9a   :  { %v192_v54 = vrot.slane %v1095_v58, %v1082_v48  ;;  %v196_v55 = vrot.slane %v1097_v59, %v1082_v48  ;;  %v204_v56 = vrot.slane %v1095_v58, %v1085_v52  ;;  %v208_v57 = vrot.slane %v1097_v59, %v1085_v52 }
  0x9b   :  { %v187_v24 = vpop.permute.xlu1 %186  ;;  %v171_v62 = vadd.f32 %v169_v41, %v143_v38  ;;  %v172_v63 = vadd.f32 %v170_v42, %v144_v39  ;;  %v183_v12 = vadd.f32 %v181_v47, %v155_v51  ;;  %v184_v13 = vadd.f32 %v182_v43, %v156_v53 }
  0x9c   :  { %v197_v4 = vmul.f32 %v192_v54, %v187_v24  ;;  %v198_v7 = vmul.f32 %v196_v55, %v187_v24  ;;  %v209_v8 = vmul.f32 %v204_v56, %v187_v24  ;;  %v210_v9 = vmul.f32 %v208_v57, %v187_v24 }
  0x9d   :  { %v222_v2 = vpop.permute.xlu0 %221 }
  0x9e   :  { %v199_v17 = vadd.f32 %v197_v4, %v171_v62  ;;  %v200_v18 = vadd.f32 %v198_v7, %v172_v63  ;;  %v211_v19 = vadd.f32 %v209_v8, %v183_v12  ;;  %v212_v20 = vadd.f32 %v210_v9, %v184_v13 }
  0x9f   :  { %v216_v46 = vpop.permute.xlu1 %215 }
  0xa0   :  { %v218_v49 = vsel %vm217_vm1, %v214_v33, %v216_v46  ;;  %v219_v50 = vsel %vm217_vm1, %v216_v46, %v214_v33 }
  0xa1   :  { %v227_v60 = vrot.slane %v218_v49, %v1064_v35  ;;  %v231_v61 = vrot.slane %v219_v50, %v1064_v35  ;;  %v239_v0 = vrot.slane %v218_v49, %v1066_v36  ;;  %v243_v1 = vrot.slane %v219_v50, %v1066_v36 }
  0xa2   :  { %v255_v58 = vrot.slane %v218_v49, %v1078_v44  ;;  %v259_v59 = vrot.slane %v219_v50, %v1078_v44  ;;  %v267_v10 = vrot.slane %v218_v49, %v1080_v45  ;;  %v271_v11 = vrot.slane %v219_v50, %v1080_v45  ;;  %v313_v46 = vpop.permute.xlu0 %312 }
  0xa3   :  { %v250_v3 = vpop.permute.xlu1 %249  ;;  %v232_v14 = vmul.f32 %v227_v60, %v222_v2  ;;  %v233_v15 = vmul.f32 %v231_v61, %v222_v2  ;;  %v244_v5 = vmul.f32 %v239_v0, %v222_v2  ;;  %v245_v16 = vmul.f32 %v243_v1, %v222_v2 }
  0xa4   :  { %v260_v22 = vmul.f32 %v255_v58, %v250_v3  ;;  %v261_v6 = vmul.f32 %v259_v59, %v250_v3  ;;  %v272_v23 = vmul.f32 %v267_v10, %v250_v3  ;;  %v273_v24 = vmul.f32 %v271_v11, %v250_v3 }
  0xa5   :  { %v234_v25 = vadd.f32 %v232_v14, %v199_v17  ;;  %v235_v26 = vadd.f32 %v233_v15, %v200_v18  ;;  %v283_v27 = vrot.slane %v218_v49, %v1082_v48  ;;  %v287_v28 = vrot.slane %v219_v50, %v1082_v48 }
  0xa6   :  { %v246_v29 = vadd.f32 %v244_v5, %v211_v19  ;;  %v247_v30 = vadd.f32 %v245_v16, %v212_v20  ;;  %v295_v31 = vrot.slane %v218_v49, %v1085_v52  ;;  %v299_v32 = vrot.slane %v219_v50, %v1085_v52 }
  0xa7   :  { %v262_v41 = vadd.f32 %v260_v22, %v234_v25  ;;  %v263_v42 = vadd.f32 %v261_v6, %v235_v26  ;;  %v341_v9 = vpop.permute.xlu0 %340 }
  0xa8   :  { %v278_v21 = vpop.permute.xlu1 %277  ;;  %v274_v47 = vadd.f32 %v272_v23, %v246_v29  ;;  %v275_v43 = vadd.f32 %v273_v24, %v247_v30 }
  0xa9   :  { %v288_v33 = vmul.f32 %v283_v27, %v278_v21  ;;  %v289_v34 = vmul.f32 %v287_v28, %v278_v21  ;;  %v300_v38 = vmul.f32 %v295_v31, %v278_v21  ;;  %v301_v39 = vmul.f32 %v299_v32, %v278_v21 }
  0xab   :  { %v290_v51 = vadd.f32 %v288_v33, %v262_v41  ;;  %v291_v53 = vadd.f32 %v289_v34, %v263_v42  ;;  %v302_v55 = vadd.f32 %v300_v38, %v274_v47  ;;  %v303_v56 = vadd.f32 %v301_v39, %v275_v43  ;;  %v396_v26 = vpop.permute.xlu0 %395 }
  0xac   :  { %v305_v37 = vpop.permute.xlu1 %304 }
  0xb0   :  { %v307_v54 = vpop.permute.xlu1 %306 }
  0xb1   :  { %v309_v49 = vsel %vm308_vm2, %v305_v37, %v307_v54  ;;  %v310_v57 = vsel %vm308_vm2, %v307_v54, %v305_v37 }
  0xb2   :  { %v318_v50 = vrot.slane %v309_v49, %v1064_v35  ;;  %v322_v60 = vrot.slane %v310_v57, %v1064_v35  ;;  %v330_v61 = vrot.slane %v309_v49, %v1066_v36  ;;  %v334_v62 = vrot.slane %v310_v57, %v1066_v36 }
  0xb3   :  { %v346_v63 = vrot.slane %v309_v49, %v1078_v44  ;;  %v350_v0 = vrot.slane %v310_v57, %v1078_v44  ;;  %v358_v1 = vrot.slane %v309_v49, %v1080_v45  ;;  %v362_v2 = vrot.slane %v310_v57, %v1080_v45 }
  0xb4   :  { %v323_v3 = vmul.f32 %v318_v50, %v313_v46  ;;  %v324_v4 = vmul.f32 %v322_v60, %v313_v46  ;;  %v335_v7 = vmul.f32 %v330_v61, %v313_v46  ;;  %v336_v8 = vmul.f32 %v334_v62, %v313_v46  ;;  %v369_v58 = vpop.permute.xlu1 %368 }
  0xb5   :  { %v351_v13 = vmul.f32 %v346_v63, %v341_v9  ;;  %v352_v14 = vmul.f32 %v350_v0, %v341_v9  ;;  %v374_v15 = vrot.slane %v309_v49, %v1082_v48  ;;  %v378_v5 = vrot.slane %v310_v57, %v1082_v48 }
  0xb6   :  { %v326_v59 = vadd.f32 %v324_v4, %v291_v53  ;;  %v338_v10 = vadd.f32 %v336_v8, %v303_v56  ;;  %v325_v11 = vadd.f32 %v323_v3, %v290_v51  ;;  %v337_v12 = vadd.f32 %v335_v7, %v302_v55 }
  0xb7   :  { %v363_v16 = vmul.f32 %v358_v1, %v341_v9  ;;  %v364_v17 = vmul.f32 %v362_v2, %v341_v9  ;;  %v386_v18 = vrot.slane %v309_v49, %v1085_v52  ;;  %v390_v19 = vrot.slane %v310_v57, %v1085_v52  ;;  %v432_v49 = vpop.permute.xlu0 %431 }
  0xb8   :  { %v353_v20 = vadd.f32 %v351_v13, %v325_v11  ;;  %v354_v21 = vadd.f32 %v352_v14, %v326_v59  ;;  %v379_v24 = vmul.f32 %v374_v15, %v369_v58  ;;  %v380_v25 = vmul.f32 %v378_v5, %v369_v58 }
  0xb9   :  { %v404_v22 = vpop.permute.xlu1 %403  ;;  %v365_v6 = vadd.f32 %v363_v16, %v337_v12  ;;  %v366_v23 = vadd.f32 %v364_v17, %v338_v10  ;;  %v391_v27 = vmul.f32 %v386_v18, %v369_v58  ;;  %v392_v28 = vmul.f32 %v390_v19, %v369_v58 }
  0xba   :  { %v381_v29 = vadd.f32 %v379_v24, %v353_v20  ;;  %v382_v30 = vadd.f32 %v380_v25, %v354_v21 }
  0xbb   :  { %v393_v32 = vadd.f32 %v391_v27, %v365_v6  ;;  %v394_v33 = vadd.f32 %v392_v28, %v366_v23  ;;  %v487_v14 = vpop.permute.xlu0 %486 }
  0xbd   :  { %v398_v31 = vpop.permute.xlu1 %397 }
  0xbe   :  { %v400_v34 = vsel %vm399_vm3, %v396_v26, %v398_v31  ;;  %v401_v37 = vsel %vm399_vm3, %v398_v31, %v396_v26 }
  0xbf   :  { %v409_v38 = vrot.slane %v400_v34, %v1064_v35  ;;  %v413_v39 = vrot.slane %v401_v37, %v1064_v35  ;;  %v421_v41 = vrot.slane %v400_v34, %v1066_v36  ;;  %v425_v42 = vrot.slane %v401_v37, %v1066_v36 }
  0xc0   :  { %v437_v46 = vrot.slane %v400_v34, %v1078_v44  ;;  %v441_v47 = vrot.slane %v401_v37, %v1078_v44  ;;  %v449_v43 = vrot.slane %v400_v34, %v1080_v45  ;;  %v453_v51 = vrot.slane %v401_v37, %v1080_v45 }
  0xc1   :  { %v414_v53 = vmul.f32 %v409_v38, %v404_v22  ;;  %v415_v54 = vmul.f32 %v413_v39, %v404_v22  ;;  %v426_v55 = vmul.f32 %v421_v41, %v404_v22  ;;  %v427_v56 = vmul.f32 %v425_v42, %v404_v22  ;;  %v460_v57 = vpop.permute.xlu1 %459 }
  0xc2   :  { %v442_v63 = vmul.f32 %v437_v46, %v432_v49  ;;  %v443_v0 = vmul.f32 %v441_v47, %v432_v49  ;;  %v465_v1 = vrot.slane %v400_v34, %v1082_v48  ;;  %v469_v2 = vrot.slane %v401_v37, %v1082_v48 }
  0xc3   :  { %v417_v50 = vadd.f32 %v415_v54, %v382_v30  ;;  %v429_v60 = vadd.f32 %v427_v56, %v394_v33  ;;  %v416_v61 = vadd.f32 %v414_v53, %v381_v29  ;;  %v428_v62 = vadd.f32 %v426_v55, %v393_v32 }
  0xc4   :  { %v454_v3 = vmul.f32 %v449_v43, %v432_v49  ;;  %v455_v4 = vmul.f32 %v453_v51, %v432_v49  ;;  %v477_v7 = vrot.slane %v400_v34, %v1085_v52  ;;  %v481_v8 = vrot.slane %v401_v37, %v1085_v52  ;;  %v523_v34 = vpop.permute.xlu0 %522 }
  0xc5   :  { %v444_v9 = vadd.f32 %v442_v63, %v416_v61  ;;  %v445_v58 = vadd.f32 %v443_v0, %v417_v50  ;;  %v470_v12 = vmul.f32 %v465_v1, %v460_v57  ;;  %v471_v13 = vmul.f32 %v469_v2, %v460_v57 }
  0xc6   :  { %v495_v59 = vpop.permute.xlu1 %494  ;;  %v456_v10 = vadd.f32 %v454_v3, %v428_v62  ;;  %v457_v11 = vadd.f32 %v455_v4, %v429_v60  ;;  %v482_v15 = vmul.f32 %v477_v7, %v460_v57  ;;  %v483_v5 = vmul.f32 %v481_v8, %v460_v57 }
  0xc7   :  { %v472_v16 = vadd.f32 %v470_v12, %v444_v9  ;;  %v473_v17 = vadd.f32 %v471_v13, %v445_v58 }
  0xc8   :  { %v484_v19 = vadd.f32 %v482_v15, %v456_v10  ;;  %v485_v20 = vadd.f32 %v483_v5, %v457_v11  ;;  %v578_v0 = vpop.permute.xlu0 %577 }
  0xca   :  { %v489_v18 = vpop.permute.xlu1 %488 }
  0xcb   :  { %v491_v21 = vsel %vm490_vm4, %v487_v14, %v489_v18  ;;  %v492_v22 = vsel %vm490_vm4, %v489_v18, %v487_v14 }
  0xcc   :  { %v500_v6 = vrot.slane %v491_v21, %v1064_v35  ;;  %v504_v23 = vrot.slane %v492_v22, %v1064_v35  ;;  %v512_v24 = vrot.slane %v491_v21, %v1066_v36  ;;  %v516_v25 = vrot.slane %v492_v22, %v1066_v36 }
  0xcd   :  { %v528_v26 = vrot.slane %v491_v21, %v1078_v44  ;;  %v532_v27 = vrot.slane %v492_v22, %v1078_v44  ;;  %v540_v28 = vrot.slane %v491_v21, %v1080_v45  ;;  %v544_v29 = vrot.slane %v492_v22, %v1080_v45 }
  0xce   :  { %v505_v30 = vmul.f32 %v500_v6, %v495_v59  ;;  %v506_v31 = vmul.f32 %v504_v23, %v495_v59  ;;  %v517_v32 = vmul.f32 %v512_v24, %v495_v59  ;;  %v518_v33 = vmul.f32 %v516_v25, %v495_v59  ;;  %v551_v37 = vpop.permute.xlu1 %550 }
  0xcf   :  { %v533_v46 = vmul.f32 %v528_v26, %v523_v34  ;;  %v534_v47 = vmul.f32 %v532_v27, %v523_v34  ;;  %v556_v43 = vrot.slane %v491_v21, %v1082_v48  ;;  %v560_v51 = vrot.slane %v492_v22, %v1082_v48 }
  0xd0   :  { %v508_v38 = vadd.f32 %v506_v31, %v473_v17  ;;  %v520_v39 = vadd.f32 %v518_v33, %v485_v20  ;;  %v507_v41 = vadd.f32 %v505_v30, %v472_v16  ;;  %v519_v42 = vadd.f32 %v517_v32, %v484_v19 }
  0xd1   :  { %v545_v53 = vmul.f32 %v540_v28, %v523_v34  ;;  %v546_v54 = vmul.f32 %v544_v29, %v523_v34  ;;  %v568_v55 = vrot.slane %v491_v21, %v1085_v52  ;;  %v572_v56 = vrot.slane %v492_v22, %v1085_v52  ;;  %v614_v21 = vpop.permute.xlu0 %613 }
  0xd2   :  { %v535_v49 = vadd.f32 %v533_v46, %v507_v41  ;;  %v536_v57 = vadd.f32 %v534_v47, %v508_v38  ;;  %v561_v62 = vmul.f32 %v556_v43, %v551_v37  ;;  %v562_v63 = vmul.f32 %v560_v51, %v551_v37 }
  0xd3   :  { %v586_v50 = vpop.permute.xlu1 %585  ;;  %v547_v60 = vadd.f32 %v545_v53, %v519_v42  ;;  %v548_v61 = vadd.f32 %v546_v54, %v520_v39  ;;  %v573_v1 = vmul.f32 %v568_v55, %v551_v37  ;;  %v574_v2 = vmul.f32 %v572_v56, %v551_v37 }
  0xd4   :  { %v563_v3 = vadd.f32 %v561_v62, %v535_v49  ;;  %v564_v4 = vadd.f32 %v562_v63, %v536_v57 }
  0xd5   :  { %v575_v8 = vadd.f32 %v573_v1, %v547_v60  ;;  %v576_v9 = vadd.f32 %v574_v2, %v548_v61  ;;  %v669_v51 = vpop.permute.xlu0 %668 }
  0xd7   :  { %v580_v7 = vpop.permute.xlu1 %579 }
  0xd8   :  { %v582_v58 = vsel %vm581_vm5, %v578_v0, %v580_v7  ;;  %v583_v59 = vsel %vm581_vm5, %v580_v7, %v578_v0 }
  0xd9   :  { %v591_v10 = vrot.slane %v582_v58, %v1064_v35  ;;  %v595_v11 = vrot.slane %v583_v59, %v1064_v35  ;;  %v603_v12 = vrot.slane %v582_v58, %v1066_v36  ;;  %v607_v13 = vrot.slane %v583_v59, %v1066_v36 }
  0xda   :  { %v619_v14 = vrot.slane %v582_v58, %v1078_v44  ;;  %v623_v15 = vrot.slane %v583_v59, %v1078_v44  ;;  %v631_v5 = vrot.slane %v582_v58, %v1080_v45  ;;  %v635_v16 = vrot.slane %v583_v59, %v1080_v45 }
  0xdb   :  { %v596_v17 = vmul.f32 %v591_v10, %v586_v50  ;;  %v597_v18 = vmul.f32 %v595_v11, %v586_v50  ;;  %v608_v19 = vmul.f32 %v603_v12, %v586_v50  ;;  %v609_v20 = vmul.f32 %v607_v13, %v586_v50  ;;  %v642_v22 = vpop.permute.xlu1 %641 }
  0xdc   :  { %v624_v26 = vmul.f32 %v619_v14, %v614_v21  ;;  %v625_v27 = vmul.f32 %v623_v15, %v614_v21  ;;  %v647_v28 = vrot.slane %v582_v58, %v1082_v48  ;;  %v651_v29 = vrot.slane %v583_v59, %v1082_v48 }
  0xdd   :  { %v599_v6 = vadd.f32 %v597_v18, %v564_v4  ;;  %v611_v23 = vadd.f32 %v609_v20, %v576_v9  ;;  %v598_v24 = vadd.f32 %v596_v17, %v563_v3  ;;  %v610_v25 = vadd.f32 %v608_v19, %v575_v8 }
  0xde   :  { %v636_v30 = vmul.f32 %v631_v5, %v614_v21  ;;  %v637_v31 = vmul.f32 %v635_v16, %v614_v21  ;;  %v659_v32 = vrot.slane %v582_v58, %v1085_v52  ;;  %v663_v33 = vrot.slane %v583_v59, %v1085_v52  ;;  %v705_v59 = vpop.permute.xlu0 %704 }
  0xdf   :  { %v626_v34 = vadd.f32 %v624_v26, %v598_v24  ;;  %v627_v37 = vadd.f32 %v625_v27, %v599_v6  ;;  %v652_v42 = vmul.f32 %v647_v28, %v642_v22  ;;  %v653_v46 = vmul.f32 %v651_v29, %v642_v22 }
  0xe0   :  { %v677_v38 = vpop.permute.xlu1 %676  ;;  %v638_v39 = vadd.f32 %v636_v30, %v610_v25  ;;  %v639_v41 = vadd.f32 %v637_v31, %v611_v23  ;;  %v664_v47 = vmul.f32 %v659_v32, %v642_v22  ;;  %v665_v43 = vmul.f32 %v663_v33, %v642_v22 }
  0xe1   :  { %v654_v53 = vadd.f32 %v652_v42, %v626_v34  ;;  %v655_v54 = vadd.f32 %v653_v46, %v627_v37 }
  0xe2   :  { %v666_v56 = vadd.f32 %v664_v47, %v638_v39  ;;  %v667_v49 = vadd.f32 %v665_v43, %v639_v41  ;;  %v760_v27 = vpop.permute.xlu0 %759 }
  0xe4   :  { %v671_v55 = vpop.permute.xlu1 %670 }
  0xe5   :  { %v673_v57 = vsel %vm672_vm6, %v669_v51, %v671_v55  ;;  %v674_v50 = vsel %vm672_vm6, %v671_v55, %v669_v51 }
  0xe6   :  { %v682_v60 = vrot.slane %v673_v57, %v1064_v35  ;;  %v686_v61 = vrot.slane %v674_v50, %v1064_v35  ;;  %v694_v62 = vrot.slane %v673_v57, %v1066_v36  ;;  %v698_v63 = vrot.slane %v674_v50, %v1066_v36  ;;  %v796_v47 = vpop.permute.xlu0 %795 }
  0xe7   :  { %v710_v0 = vrot.slane %v673_v57, %v1078_v44  ;;  %v714_v1 = vrot.slane %v674_v50, %v1078_v44  ;;  %v722_v2 = vrot.slane %v673_v57, %v1080_v45  ;;  %v726_v3 = vrot.slane %v674_v50, %v1080_v45 }
  0xe8   :  { %v687_v4 = vmul.f32 %v682_v60, %v677_v38  ;;  %v688_v7 = vmul.f32 %v686_v61, %v677_v38  ;;  %v699_v8 = vmul.f32 %v694_v62, %v677_v38  ;;  %v700_v9 = vmul.f32 %v698_v63, %v677_v38  ;;  %v733_v58 = vpop.permute.xlu1 %732 }
  0xe9   :  { %v715_v14 = vmul.f32 %v710_v0, %v705_v59  ;;  %v716_v15 = vmul.f32 %v714_v1, %v705_v59  ;;  %v738_v5 = vrot.slane %v673_v57, %v1082_v48  ;;  %v742_v16 = vrot.slane %v674_v50, %v1082_v48 }
  0xea   :  { %v690_v10 = vadd.f32 %v688_v7, %v655_v54  ;;  %v702_v11 = vadd.f32 %v700_v9, %v667_v49  ;;  %v689_v12 = vadd.f32 %v687_v4, %v654_v53  ;;  %v701_v13 = vadd.f32 %v699_v8, %v666_v56 }
  0xeb   :  { %v727_v17 = vmul.f32 %v722_v2, %v705_v59  ;;  %v728_v18 = vmul.f32 %v726_v3, %v705_v59  ;;  %v750_v19 = vrot.slane %v673_v57, %v1085_v52  ;;  %v754_v20 = vrot.slane %v674_v50, %v1085_v52 }
  0xec   :  { %v717_v21 = vadd.f32 %v715_v14, %v689_v12  ;;  %v718_v22 = vadd.f32 %v716_v15, %v690_v10  ;;  %v743_v25 = vmul.f32 %v738_v5, %v733_v58  ;;  %v744_v26 = vmul.f32 %v742_v16, %v733_v58 }
  0xed   :  { %v768_v6 = vpop.permute.xlu1 %767  ;;  %v729_v23 = vadd.f32 %v727_v17, %v701_v13  ;;  %v730_v24 = vadd.f32 %v728_v18, %v702_v11  ;;  %v755_v28 = vmul.f32 %v750_v19, %v733_v58  ;;  %v756_v29 = vmul.f32 %v754_v20, %v733_v58 }
  0xee   :  { %v745_v30 = vadd.f32 %v743_v25, %v717_v21  ;;  %v746_v31 = vadd.f32 %v744_v26, %v718_v22 }
  0xef   :  { %v757_v33 = vadd.f32 %v755_v28, %v729_v23  ;;  %v758_v34 = vadd.f32 %v756_v29, %v730_v24 }
  0xf1   :  { %v762_v32 = vpop.permute.xlu1 %761 }
  0xf2   :  { %v764_v37 = vsel %vm763_vm7, %v760_v27, %v762_v32  ;;  %v765_v38 = vsel %vm763_vm7, %v762_v32, %v760_v27 }
  0xf3   :  { %v773_v39 = vrot.slane %v764_v37, %v1064_v35  ;;  %v777_v41 = vrot.slane %v765_v38, %v1064_v35  ;;  %v785_v42 = vrot.slane %v764_v37, %v1066_v36  ;;  %v789_v46 = vrot.slane %v765_v38, %v1066_v36 }
  0xf4   :  { %v801_v40 = vrot.slane %v764_v37, %v1078_v44  ;;  %v805_v43 = vrot.slane %v765_v38, %v1078_v44  ;;  %v813_v51 = vrot.slane %v764_v37, %v1080_v45  ;;  %v817_v53 = vrot.slane %v765_v38, %v1080_v45 }
  0xf5   :  { %v778_v54 = vmul.f32 %v773_v39, %v768_v6  ;;  %v779_v55 = vmul.f32 %v777_v41, %v768_v6  ;;  %v790_v56 = vmul.f32 %v785_v42, %v768_v6  ;;  %v791_v49 = vmul.f32 %v789_v46, %v768_v6  ;;  %v824_v0 = vpop.permute.xlu1 %823 }
  0xf6   :  { %v806_v57 = vmul.f32 %v801_v40, %v796_v47  ;;  %v807_v50 = vmul.f32 %v805_v43, %v796_v47  ;;  %v818_v35 = vmul.f32 %v813_v51, %v796_v47  ;;  %v819_v60 = vmul.f32 %v817_v53, %v796_v47 }
  0xf7   :  { %v781_v61 = vadd.f32 %v779_v55, %v746_v31  ;;  %v793_v62 = vadd.f32 %v791_v49, %v758_v34  ;;  %v780_v36 = vadd.f32 %v778_v54, %v745_v30  ;;  %v792_v63 = vadd.f32 %v790_v56, %v757_v33 }
  0xf8   :  { %v829_v1 = vrot.slane %v764_v37, %v1082_v48  ;;  %v833_v44 = vrot.slane %v765_v38, %v1082_v48  ;;  %v841_v2 = vrot.slane %v764_v37, %v1085_v52  ;;  %v845_v45 = vrot.slane %v765_v38, %v1085_v52 }
  0xf9   :  { %v808_v3 = vadd.f32 %v806_v57, %v780_v36  ;;  %v809_v4 = vadd.f32 %v807_v50, %v781_v61  ;;  %v820_v7 = vadd.f32 %v818_v35, %v792_v63  ;;  %v821_v8 = vadd.f32 %v819_v60, %v793_v62 }
  0xfa   :  { %v834_v9 = vmul.f32 %v829_v1, %v824_v0  ;;  %v835_v58 = vmul.f32 %v833_v44, %v824_v0  ;;  %v846_v59 = vmul.f32 %v841_v2, %v824_v0  ;;  %v847_v10 = vmul.f32 %v845_v45, %v824_v0 }
  0xfc   :  { %v836_v11 = vadd.f32 %v834_v9, %v808_v3  ;;  %v837_v12 = vadd.f32 %v835_v58, %v809_v4  ;;  %v848_v13 = vadd.f32 %v846_v59, %v820_v7  ;;  %v849_v14 = vadd.f32 %v847_v10, %v821_v8 }
  0xfe   :  { %850 = vst [vmem:[%s1241_s3] sm:$0x1f] %v836_v11  ;;  %851 = vst [vmem:[%s1241_s3 + $0x8] sm:$0x1f] %v837_v12 }
  0xff   :  { %860 = vst [vmem:[%s1241_s3 + $0x10] sm:$0x1f] %v848_v13  ;;  %861 = vst [vmem:[%s1241_s3 + $0x18] sm:$0x1f] %v849_v14 }
 0x100   :  { %859 = vsyncpa [#allocation3], 1 }

</bundles_post_ra>
